<compile_context>
chip_gen: v7x
topology: tpu7x:2x2x1
jax: 0.10.0
libtpu: 0.0.40
codegen_flags: <defaults>
</compile_context>

<pallas_src>
import jax
import jax.numpy as jnp
from jax.experimental import pallas as pl
from jax.experimental.pallas import tpu as pltpu


_TARGET_STREAM_BYTES = 8 << 20   # ~8 MiB of input per stream per tile


def _vmem_capacity_bytes() -> int:
    try:
        return int(pltpu.get_tpu_info().vmem_capacity_bytes)
    except Exception:
        return 64 * 1024 * 1024  # conservative fallback (v7x per-TC VMEM)


def _bytes_per_tile_row(c: int, itemsize: int) -> int:
    # 2 input streams x 2 pipeline buffers of raw logits, plus ~4 live f32
    # (tn, C) intermediates in the body (s, t_exp, s_shift, exp/products).
    return 2 * 2 * c * itemsize + 4 * c * 4


def _pick_tile_rows(n: int, c: int, itemsize: int, buffer_budget: int) -> int:
    row_align = max(8, 32 // itemsize)                       # 8 rows f32, 16 rows bf16
    tn_vmem = buffer_budget // _bytes_per_tile_row(c, itemsize)
    tn_stream = _TARGET_STREAM_BYTES // (c * itemsize)        # bytes-based cap (not rows)
    tn = max(min(tn_vmem, tn_stream), row_align)
    if tn >= n:
        return n                                              # block == full dim is legal
    return max((tn // row_align) * row_align, row_align)


def distillation_loss(output, old_target, temperature, frac, *, tile_rows=None):
    """output, old_target: (N, C) logits (f32 or bf16 — bf16 preferred in HBM,
    the kernel upcasts per-tile); temperature, frac: scalars."""
    assert output.shape == old_target.shape and output.ndim == 2
    n, c = output.shape
    itemsize = jnp.dtype(output.dtype).itemsize

    phys_vmem = _vmem_capacity_bytes()
    # ~48 MiB usable on v7x (64 MiB physical), ~96 MiB on v5e/v6e (128 MiB).
    vmem_budget = min((phys_vmem * 3) // 4, 100 * 1024 * 1024)
    buffer_budget = vmem_budget - (2 << 20)                   # headroom for compiler scratch

    if tile_rows is None:
        tn = _pick_tile_rows(n, c, itemsize, buffer_budget)
    else:
        row_align = max(8, 32 // itemsize)
        tn = min(int(tile_rows), n)
        if tn != n and tn % row_align != 0:
            raise ValueError(f"tile_rows must be a multiple of {row_align} or >= N")

    needed = tn * _bytes_per_tile_row(c, itemsize) + (2 << 20)
    vmem_limit = max(vmem_budget, needed)
    vmem_limit = min(vmem_limit, phys_vmem - (4 << 20))       # clamp to this generation

    num_tiles = (n + tn - 1) // tn
    mask_tail = (n % tn) != 0

    # Fold scalars on the host: kernel only multiplies by 1/T (SMEM);
    # -frac/N is applied to the tiny partial-sum vector outside.
    inv_t = (jnp.float32(1.0) / jnp.asarray(temperature, jnp.float32)).reshape(1)
    neg_scale = -jnp.asarray(frac, jnp.float32) / jnp.float32(n)   # true batch size N

    def kernel(inv_t_ref, stud_ref, teach_ref, part_ref):
        i = pl.program_id(0)
        itv = inv_t_ref[0]
        s = stud_ref[...].astype(jnp.float32) * itv          # student logits / T
        t = teach_ref[...].astype(jnp.float32) * itv         # teacher logits / T

        # student log-softmax pieces (numerically stable)
        s_max = jnp.max(s, axis=1, keepdims=True)
        s_shift = s - s_max
        s_lse = jnp.log(jnp.sum(jnp.exp(s_shift), axis=1, keepdims=True))

        # teacher softmax pieces
        t_exp = jnp.exp(t - jnp.max(t, axis=1, keepdims=True))
        t_sum = jnp.sum(t_exp, axis=1, keepdims=True)

        # sum_c p_t*log_p_s == sum_c(t_exp*s_shift)/t_sum - s_lse  (sum_c p_t == 1)
        cross = jnp.sum(t_exp * s_shift, axis=1, keepdims=True)
        # approx=False keeps exact agreement with the reference; the operand is only
        # (tn, 1) so this costs ~nothing on any generation (incl. v5e's weaker EUP).
        row = cross * pl.reciprocal(t_sum, approx=False) - s_lse      # (tn, 1)

        if mask_tail:
            last = pl.num_programs(0) - 1

            @pl.when(i == last)
            def _tail_tile():
                row_ids = jax.lax.broadcasted_iota(jnp.int32, row.shape, 0)
                masked = jnp.where(row_ids < (n - i * tn), row, 0.0)
                part_ref[...] = jnp.sum(masked, axis=0, keepdims=True).reshape(1, 1, 1)

            @pl.when(i != last)
            def _full_tile():
                part_ref[...] = jnp.sum(row, axis=0, keepdims=True).reshape(1, 1, 1)
        else:
            part_ref[...] = jnp.sum(row, axis=0, keepdims=True).reshape(1, 1, 1)

    # Per-tile partial sums on a fully "parallel" grid: v7x megacore-shards the
    # batch axis across its 2 TensorCores; v5e/v6e run it as the same serial loop.
    partials = pl.pallas_call(
        kernel,
        out_shape=jax.ShapeDtypeStruct((num_tiles, 1, 1), jnp.float32),
        grid=(num_tiles,),
        in_specs=[
            pl.BlockSpec(memory_space=pltpu.MemorySpace.SMEM),      # [1/T]
            pl.BlockSpec((tn, c), lambda i: (i, 0)),                # student logits
            pl.BlockSpec((tn, c), lambda i: (i, 0)),                # teacher logits
        ],
        out_specs=pl.BlockSpec((1, 1, 1), lambda i: (i, 0, 0)),     # per-tile partial
        compiler_params=pltpu.CompilerParams(
            dimension_semantics=("parallel",),
            vmem_limit_bytes=int(vmem_limit),
        ),
    )(inv_t, output, old_target)

    # Tiny two-level reduction outside the kernel (num_tiles scalars).
    return jnp.sum(partials) * neg_scale


def _reference(output, old_target, temperature, frac):
    log_p_s = jax.nn.log_softmax(output.astype(jnp.float32) / temperature, axis=1)
    p_t = jax.nn.softmax(old_target.astype(jnp.float32) / temperature, axis=1)
    return -jnp.sum(p_t * log_p_s) / output.shape[0] * frac


if __name__ == "__main__":
    key = jax.random.PRNGKey(0)
    temperature, frac = 2.0, 0.5

    # Case 1: small, single tile, f32 (matches original module's typical use).
    k1, k2, key = jax.random.split(key, 3)
    o1 = jax.random.normal(k1, (8, 32), dtype=jnp.float32)
    t1 = jax.random.normal(k2, (8, 32), dtype=jnp.float32)
    l1 = jax.block_until_ready(distillation_loss(o1, t1, temperature, frac))
    r1 = _reference(o1, t1, temperature, frac)
    assert jnp.allclose(l1, r1, atol=2e-5, rtol=2e-5), (l1, r1)

    # Case 2: multi-tile parallel grid with a ragged tail (exercises per-tile
    # partial sums + pl.when-gated tail masking).
    k1, k2, key = jax.random.split(key, 3)
    o2 = jax.random.normal(k1, (40, 128), dtype=jnp.float32)
    t2 = jax.random.normal(k2, (40, 128), dtype=jnp.float32)
    l2 = jax.block_until_ready(distillation_loss(o2, t2, temperature, frac, tile_rows=16))
    r2 = _reference(o2, t2, temperature, frac)
    assert jnp.allclose(l2, r2, atol=2e-5, rtol=2e-5), (l2, r2)

    # Case 3: bf16 logits end-to-end (kernel upcasts to f32 internally).
    k1, k2, key = jax.random.split(key, 3)
    o3 = jax.random.normal(k1, (32, 64), dtype=jnp.bfloat16)
    t3 = jax.random.normal(k2, (32, 64), dtype=jnp.bfloat16)
    l3 = jax.block_until_ready(distillation_loss(o3, t3, temperature, frac, tile_rows=16))
    r3 = _reference(o3, t3, temperature, frac)
    assert jnp.allclose(l3, r3, atol=1e-4, rtol=1e-4), (l3, r3)

    print("KERNEL_OK")
</pallas_src>

<mosaic_0001>
module attributes {stable_mosaic.version = 11 : i64} {
  func.func @kernel(%arg0: i32, %arg1: memref<1xf32, #tpu.memory_space<smem>>, %arg2: memref<8x32xf32, #tpu.memory_space<vmem>>, %arg3: memref<8x32xf32, #tpu.memory_space<vmem>>, %arg4: memref<1x1x1xf32, #tpu.memory_space<vmem>>) attributes {dimension_semantics = [#tpu.dimension_semantics<parallel>], iteration_bounds = array<i64: 1>, scalar_prefetch = 0 : i64, scratch_operands = 0 : i64, tpu.core_type = #tpu.core_type<tc>, window_params = [{transform_indices = @transform_0, window_bounds = array<i64: 1>}, {transform_indices = @transform_1, window_bounds = array<i64: 8, 32>}, {transform_indices = @transform_2, window_bounds = array<i64: 8, 32>}, {transform_indices = @transform_3, window_bounds = array<i64: 1, 1, 1>}]} {
    %c0 = arith.constant 0 : index
    %0 = memref.load %arg1[%c0] : memref<1xf32, #tpu.memory_space<smem>>
    %c0_0 = arith.constant 0 : index
    %c0_1 = arith.constant 0 : index
    %1 = vector.load %arg2[%c0_0, %c0_1] : memref<8x32xf32, #tpu.memory_space<vmem>>, vector<8x32xf32>
    %2 = vector.broadcast %0 : f32 to vector<8x32xf32>
    %3 = arith.mulf %1, %2 : vector<8x32xf32>
    %c0_2 = arith.constant 0 : index
    %c0_3 = arith.constant 0 : index
    %4 = vector.load %arg3[%c0_2, %c0_3] : memref<8x32xf32, #tpu.memory_space<vmem>>, vector<8x32xf32>
    %5 = vector.broadcast %0 : f32 to vector<8x32xf32>
    %6 = arith.mulf %4, %5 : vector<8x32xf32>
    %cst = arith.constant dense<0xFF800000> : vector<8xf32>
    %7 = vector.multi_reduction <maximumf>, %3, %cst [1] : vector<8x32xf32> to vector<8xf32>
    %8 = vector.shape_cast %7 : vector<8xf32> to vector<8x1xf32>
    %9 = vector.broadcast %8 : vector<8x1xf32> to vector<8x32xf32>
    %10 = arith.subf %3, %9 : vector<8x32xf32>
    %11 = math.exp %10 : vector<8x32xf32>
    %cst_4 = arith.constant dense<0.000000e+00> : vector<8xf32>
    %12 = vector.multi_reduction <add>, %11, %cst_4 [1] : vector<8x32xf32> to vector<8xf32>
    %13 = vector.shape_cast %12 : vector<8xf32> to vector<8x1xf32>
    %14 = math.log %13 : vector<8x1xf32>
    %cst_5 = arith.constant dense<0xFF800000> : vector<8xf32>
    %15 = vector.multi_reduction <maximumf>, %6, %cst_5 [1] : vector<8x32xf32> to vector<8xf32>
    %16 = vector.shape_cast %15 : vector<8xf32> to vector<8x1xf32>
    %17 = vector.broadcast %16 : vector<8x1xf32> to vector<8x32xf32>
    %18 = arith.subf %6, %17 : vector<8x32xf32>
    %19 = math.exp %18 : vector<8x32xf32>
    %cst_6 = arith.constant dense<0.000000e+00> : vector<8xf32>
    %20 = vector.multi_reduction <add>, %19, %cst_6 [1] : vector<8x32xf32> to vector<8xf32>
    %21 = vector.shape_cast %20 : vector<8xf32> to vector<8x1xf32>
    %22 = arith.mulf %19, %10 : vector<8x32xf32>
    %cst_7 = arith.constant dense<0.000000e+00> : vector<8xf32>
    %23 = vector.multi_reduction <add>, %22, %cst_7 [1] : vector<8x32xf32> to vector<8xf32>
    %24 = vector.shape_cast %23 : vector<8xf32> to vector<8x1xf32>
    %25 = tpu.reciprocal %21 : vector<8x1xf32> -> vector<8x1xf32>
    %26 = arith.mulf %24, %25 : vector<8x1xf32>
    %27 = arith.subf %26, %14 : vector<8x1xf32>
    %cst_8 = arith.constant dense<0.000000e+00> : vector<1xf32>
    %28 = vector.multi_reduction <add>, %27, %cst_8 [0] : vector<8x1xf32> to vector<1xf32>
    %29 = vector.shape_cast %28 : vector<1xf32> to vector<1x1xf32>
    %30 = vector.shape_cast %29 : vector<1x1xf32> to vector<1x1x1xf32>
    %c0_9 = arith.constant 0 : index
    %c0_10 = arith.constant 0 : index
    %c0_11 = arith.constant 0 : index
    %31 = vector.load %arg4[%c0_9, %c0_10, %c0_11] : memref<1x1x1xf32, #tpu.memory_space<vmem>>, vector<1x1x1xf32>
    tpu.vector_store %arg4[%c0_9, %c0_10, %c0_11], %30 {strides = array<i32>} : memref<1x1x1xf32, #tpu.memory_space<vmem>>, vector<1x1x1xf32>,
    return
  }
  func.func @transform_0(%arg0: i32) -> i32 {
    %c0_i32 = arith.constant 0 : i32
    %c0_i32_0 = arith.constant 0 : i32
    return %c0_i32 : i32
  }
  func.func @transform_1(%arg0: i32) -> (i32, i32) {
    %c0_i32 = arith.constant 0 : i32
    %c0_i32_0 = arith.constant 0 : i32
    return %arg0, %c0_i32 : i32, i32
  }
  func.func @transform_2(%arg0: i32) -> (i32, i32) {
    %c0_i32 = arith.constant 0 : i32
    %c0_i32_0 = arith.constant 0 : i32
    return %arg0, %c0_i32 : i32, i32
  }
  func.func @transform_3(%arg0: i32) -> (i32, i32, i32) {
    %c0_i32 = arith.constant 0 : i32
    %c0_i32_0 = arith.constant 0 : i32
    %c0_i32_1 = arith.constant 0 : i32
    return %arg0, %c0_i32, %c0_i32_0 : i32, i32, i32
  }
}

</mosaic_0001>

<bundles_post_ra>
// kernel: tpu_custom_call.1
= control target key start
LH: loop header
LB: loop body
LE: loop exit
PB: predicated region body
PF: predicated region fallthrough
CT: control target
= control target key end

     0   :  { %9 = vsyncpa [#allocation4], 0  ;;  %s248_s0 = inlined_call_operand.<no memory space> [shape: f32[1], index: 0, kind: input, shape index: {}]   ;;  %s249_s1 = inlined_call_operand.hbm [shape: f32[8,32], index: 1, kind: input, shape index: {}]   ;;  %s250_s2 = inlined_call_operand.hbm [shape: f32[8,32], index: 2, kind: input, shape index: {}]   ;;  %s251_s3 = inlined_call_operand.hbm [shape: f32[1,1,1], index: 3, kind: output, shape index: {}]  }
   0x1   :  { %10 = vsyncpa [#allocation7], 0 }
   0x2   :  { %11 = vsyncpa [#allocation5], 0  ;;  %s181_s12 = smov [#allocation3]   ;;  %s182_s14 = smov [#allocation6]  }
   0x3   :  { %s20_s13 = sshll.u32 %s181_s12, 4  ;;  %s30_s15 = sshll.u32 %s182_s14, 4  ;;  %s21_s13 = int_to_ptr.vmem [resolvable:$true] %s20_s13  ;;  %s31_s15 = int_to_ptr.vmem [resolvable:$true] %s30_s15 }
   0x4   :  { %s109_s18 = scalar_lea.hbm %s249_s1, 128 }
   0x5   :  { %p110_p0 = scmp.ne.s32.totalorder %s249_s1, %s109_s18  ;;  %p113_p1 = scmp.lt.u32.totalorder %s109_s18, %s249_s1 }
   0x7   :  { %p115_p2 = pnand %p113_p1, %p110_p0 }
   0x9   :  { %118 = shalt.err (!%p115_p2)
}
   0xa   :  { %s119_s23 = scalar_lea.vmem %s21_s13, 128  ;;  %p124_p4 = scmp.lt.s32.totalorder %s21_s13, %s21_s13 }
   0xb   :  { %p120_p3 = scmp.ne.s32.totalorder %s21_s13, %s119_s23  ;;  %p125_p5 = scmp.lt.s32.totalorder %s119_s23, %s119_s23 }
   0xd   :  { %p126_p6 = por %p125_p5, %p124_p4 }
   0xf   :  { %p127_p7 = pnand %p126_p6, %p120_p3 }
  0x11   :  { %130 = shalt.err (!%p127_p7)
}
  0x12   :  { %23 = dma.hbm_to_vmem [thread:$0]  %s249_s1, 128, %s21_s13, [#allocation4]  }
  0x13   :  { %s131_s28 = scalar_lea.hbm %s250_s2, 128 }
  0x14   :  { %p132_p8 = scmp.ne.s32.totalorder %s250_s2, %s131_s28  ;;  %p135_p9 = scmp.lt.u32.totalorder %s131_s28, %s250_s2 }
  0x16   :  { %p137_p10 = pnand %p135_p9, %p132_p8 }
  0x18   :  { %140 = shalt.err (!%p137_p10)
}
  0x19   :  { %s141_s6 = scalar_lea.vmem %s31_s15, 128  ;;  %p146_p12 = scmp.lt.s32.totalorder %s31_s15, %s31_s15 }
  0x1a   :  { %p142_p11 = scmp.ne.s32.totalorder %s31_s15, %s141_s6  ;;  %p147_p13 = scmp.lt.s32.totalorder %s141_s6, %s141_s6 }
  0x1c   :  { %p148_p0 = por %p147_p13, %p146_p12 }
  0x1e   :  { %p149_p1 = pnand %p148_p0, %p142_p11 }
  0x20   :  { %152 = shalt.err (!%p149_p1)
}
  0x21   :  { %33 = dma.hbm_to_vmem [thread:$0]  %s250_s2, 128, %s31_s15, [#allocation7]  }
  0x22   :  { %175 = dma.done.wait [#allocation4], 128  }
  0x23   :  { %176 = vsyncadd [#allocation4], 4294967168 }
  0x24   :  { %177 = dma.done.wait [#allocation7], 128  }
  0x25   :  { %178 = vsyncadd [#allocation7], 4294967168  ;;  %v42_v0 = vstv %s248_s0  ;;  %v41_v1 = vld [vmem:[#allocation3] sm:$0xff]  ;;  %vm46_vm0 = vcmask 261120   ;;  %v44_v2 = vld [vmem:[#allocation6] sm:$0xff]  ;;  %s183_s0 = smov [#allocation8]  }
  0x26   :  { %v43_v3 = vmul.f32 %v42_v0, %v41_v1  ;;  %v45_v4 = vmul.f32 %v44_v2, %v42_v0  ;;  %s88_s2 = sshll.u32 %s183_s0, 4  ;;  %vm80_vm1 = vcmask 0   ;;  %s89_s2 = int_to_ptr.vmem [resolvable:$true] %s88_s2 }
  0x27   :  { %s153_s10 = scalar_lea.vmem %s89_s2, 16  ;;  %s157_s11 = scalar_lea.vmem %s89_s2, 32 }
  0x28   :  { %v47_v5 = vsel %vm46_vm0, %v43_v3, -inf  ;;  %v58_v6 = vsel %vm46_vm0, %v45_v4, -inf  ;;  %p154_p2 = scmp.ne.s32.totalorder %s89_s2, %s153_s10  ;;  %p158_p3 = scmp.lt.s32.totalorder %s89_s2, %s89_s2 }
  0x29   :  { %48 = vmax.xlane.f32.xlu0 %v47_v5  ;;  %p159_p4 = scmp.lt.s32.totalorder %s157_s11, %s153_s10 }
  0x2b   :  { %p160_p5 = por %p159_p4, %p158_p3 }
  0x2d   :  { %59 = vmax.xlane.f32.xlu0 %v58_v6  ;;  %p161_p6 = pnand %p160_p5, %p154_p2 }
  0xb6   :  { %v49_v7 = vpop.xlane.xlu0 %48 }
  0xb7   :  { %v50_v8 = vsub.f32 %v43_v3, %v49_v7 }
  0xb9   :  { %v51_v9 = vmul.f32 1.442695, %v50_v8 }
  0xba   :  { %v60_v10 = vpop.xlane.xlu0 %59 }
  0xbb   :  { %101 = vpow2.f32 %v51_v9  ;;  %v61_v11 = vsub.f32 %v45_v4, %v60_v10 }
  0xbd   :  { %v62_v12 = vmul.f32 1.442695, %v61_v11 }
  0xbf   :  { %103 = vpow2.f32 %v62_v12 }
  0xc5   :  { %v102_v13 = vpop.eup %101 }
  0xc6   :  { %v53_v14 = vsel %vm46_vm0, %v102_v13, 0.0 }
  0xc7   :  { %54 = vadd.xlane.f32.xlu1 %v53_v14 }
  0xc9   :  { %v104_v15 = vpop.eup %103 }
  0xca   :  { %v64_v16 = vsel %vm46_vm0, %v104_v15, 0.0  ;;  %v67_v17 = vmul.f32 %v104_v15, %v50_v8 }
  0xcb   :  { %65 = vadd.xlane.f32.xlu1 %v64_v16 }
  0xcc   :  { %v68_v18 = vsel %vm46_vm0, %v67_v17, 0.0 }
  0xcd   :  { %69 = vadd.xlane.f32.xlu0 %v68_v18 }
 0x154   :  { %v55_v19 = vpop.xlane.xlu1 %54 }
 0x155   :  { %105 = vlog2.f32 %v55_v19 }
 0x158   :  { %v66_v20 = vpop.xlane.xlu1 %65 }
 0x159   :  { %107 = vrcp.f32 %v66_v20 }
 0x15a   :  { %v70_v23 = vpop.xlane.xlu0 %69 }
 0x15f   :  { %v106_v21 = vpop.eup %105 }
 0x160   :  { %v57_v24 = vmul.f32 0.6931472, %v106_v21 }
 0x163   :  { %v108_v22 = vpop.eup %107 }
 0x164   :  { %v72_v25 = vmul.f32 %v108_v22, %v70_v23 }
 0x166   :  { %v73_v26 = vsub.f32 %v72_v25, %v57_v24 }
 0x168   :  { %v74_v27 = vrot.slane %v73_v26, 4 }
 0x16a   :  { %v75_v28 = vadd.f32 %v74_v27, %v73_v26 }
 0x16c   :  { %v76_v29 = vrot.slane %v75_v28, 2 }
 0x16e   :  { %v77_v30 = vadd.f32 %v76_v29, %v75_v28 }
 0x170   :  { %v78_v31 = vrot.slane %v77_v30, 1 }
 0x172   :  { %v79_v32 = vadd.f32 %v78_v31, %v77_v30 }
 0x174   :  { %81 = vst.msk [vmem:[#allocation8] sm:$0x1] %vm80_vm1, %v79_v32 }
 0x175   :  { %164 = shalt.err (!%p161_p6)
}
 0x176   :  { %s165_s14 = scalar_lea.hbm %s251_s3, 16 }
 0x177   :  { %p166_p7 = scmp.ne.s32.totalorder %s251_s3, %s165_s14  ;;  %p169_p8 = scmp.lt.u32.totalorder %s165_s14, %s251_s3 }
 0x179   :  { %p171_p9 = pnand %p169_p8, %p166_p7 }
 0x17b   :  { %174 = shalt.err (!%p171_p9)
}
 0x17c   :  { %91 = dma.vmem_to_hbm [thread:$0]  %s89_s2, 16, %s251_s3, [#allocation5]  }
 0x17d   :  { %179 = dma.done.wait [#allocation5], 16  }
 0x17e   :  { %180 = vsyncadd [#allocation5], 4294967280 }
 0x17f   :  { %95 = vsyncpa [#allocation4], 1 }
 0x180   :  { %96 = vsyncpa [#allocation7], 1 }
 0x181   :  { %97 = vsyncpa [#allocation5], 1 }

</bundles_post_ra>
